<compile_context>
chip_gen: v5e
topology: v5e:2x2
jax: 0.10.0
libtpu: 0.0.40
codegen_flags: <defaults>
</compile_context>

<pallas_src>
import jax
import jax.numpy as jnp
from jax.experimental import pallas as pl
from jax.experimental.pallas import tpu as pltpu

# ---------------- problem sizes (small, in_dim = C * D > D) ----------------
G = 2             # number of independent graphs batched into one pallas_call
N = 64            # nodes per graph (batch_size * snp * num_node)
C = 2             # num_channels
D = 128           # out_dim
IN_DIM = C * D    # in_dim (256)


def gcn_kernel(feats_ref, w_comb_ref, b_comb_ref, adj_ref,
               out_norm_ref, in_norm_ref, bias_ref, out_ref):
    # Fused linear:  (feats @ fc_w + fc_b) @ block_diag(weight)
    #             == feats @ W_comb + b_comb           (per-node norm commutes)
    fsrc = (jnp.dot(feats_ref[...], w_comb_ref[...],
                    preferred_element_type=jnp.float32)
            + b_comb_ref[...]) * out_norm_ref[...]                 # [N, C*D]
    # Message passing: rst[i] = sum_j A_w[i, j] * fsrc[j]
    agg = jnp.dot(adj_ref[...], fsrc, preferred_element_type=jnp.float32)
    # Single lane-dense full-block store (256-wide, unmasked vst).
    out_ref[...] = agg * in_norm_ref[...] + bias_ref[...]


def gcn_layer(feats, fc_w, fc_b, adj_w, out_norm, in_norm, weight, bias):
    """feats [G,N,in_dim], adj_w [G,N,N], norms [G,N,1] -> output [G,N,C,D]."""
    g, n, in_dim = feats.shape
    num_channels, out_dim, _ = weight.shape
    hp = jax.lax.Precision.HIGHEST

    # block_diag(weight[0], ..., weight[C-1])  ->  [C*D, C*D]   (weights-only prep)
    bd = jnp.zeros((in_dim, in_dim), jnp.float32)
    for c in range(num_channels):
        lo = c * out_dim
        bd = bd.at[lo:lo + out_dim, lo:lo + out_dim].set(weight[c])
    w_comb = jnp.dot(fc_w, bd, precision=hp)                    # [in_dim, in_dim]
    b_comb = jnp.dot(fc_b, bd, precision=hp).reshape(1, in_dim)
    bias_flat = bias.reshape(1, in_dim)

    flops = g * (2 * n * in_dim * in_dim + 2 * n * n * in_dim)
    bytes_accessed = 4 * (w_comb.size + b_comb.size + bias_flat.size
                          + feats.size + adj_w.size + out_norm.size
                          + in_norm.size + g * n * in_dim)

    out_flat = pl.pallas_call(
        gcn_kernel,
        out_shape=jax.ShapeDtypeStruct((g, n, in_dim), jnp.float32),
        grid_spec=pltpu.PrefetchScalarGridSpec(
            num_scalar_prefetch=0,
            grid=(g,),
            in_specs=[
                pl.BlockSpec((None, n, in_dim), lambda i: (i, 0, 0)),   # feats (per graph)
                pl.BlockSpec((in_dim, in_dim), lambda i: (0, 0)),       # W_comb (resident)
                pl.BlockSpec((1, in_dim), lambda i: (0, 0)),            # b_comb (resident)
                pl.BlockSpec((None, n, n), lambda i: (i, 0, 0)),        # adj (per graph)
                pl.BlockSpec((None, n, 1), lambda i: (i, 0, 0)),        # out_norm
                pl.BlockSpec((None, n, 1), lambda i: (i, 0, 0)),        # in_norm
                pl.BlockSpec((1, in_dim), lambda i: (0, 0)),            # bias (resident)
            ],
            out_specs=pl.BlockSpec((None, n, in_dim), lambda i: (i, 0, 0)),
        ),
        compiler_params=pltpu.CompilerParams(
            dimension_semantics=("parallel",)),
        cost_estimate=pl.CostEstimate(flops=flops, transcendentals=0,
                                      bytes_accessed=bytes_accessed),
    )(feats, w_comb, b_comb, adj_w, out_norm, in_norm, bias_flat)
    return out_flat.reshape(g, n, num_channels, out_dim)


def reference_single(feats, fc_w, fc_b, adj_w, out_norm, in_norm, weight, bias):
    hp = jax.lax.Precision.HIGHEST
    h = jnp.dot(feats, fc_w, precision=hp) + fc_b[None, :]
    feat = h.reshape(-1, C, D) * out_norm[:, :, None]
    feat = jnp.einsum('bcd,cde->bce', feat, weight, precision=hp)
    rst = jnp.einsum('ij,jcd->icd', adj_w, feat, precision=hp)
    rst = rst * in_norm[:, :, None] + bias[None, :, :]
    return rst


if __name__ == "__main__":
    key = jax.random.PRNGKey(0)
    k_feat, k_fcw, k_fcb, k_adj, k_mask, k_w, k_b = jax.random.split(key, 7)

    feats = jax.random.normal(k_feat, (G, N, IN_DIM), dtype=jnp.float32)

    # nn.Linear(in_dim, in_dim) params (deterministic synthetic init), already
    # in x @ W layout.
    lin_bound = 1.0 / jnp.sqrt(IN_DIM)
    fc_w = jax.random.uniform(k_fcw, (IN_DIM, IN_DIM), jnp.float32, -lin_bound, lin_bound)
    fc_b = jax.random.uniform(k_fcb, (IN_DIM,), jnp.float32, -lin_bound, lin_bound)

    # Xavier-uniform (gain=sqrt(2)) per-channel weight [C, D, D] and bias [C, D].
    gain = jnp.sqrt(2.0)
    w_bound = gain * jnp.sqrt(6.0 / (D + D))
    weight = jax.random.uniform(k_w, (C, D, D), jnp.float32, -w_bound, w_bound)
    b_bound = gain * jnp.sqrt(6.0 / (D + C))
    bias = jax.random.uniform(k_b, (C, D), jnp.float32, -b_bound, b_bound)

    # Deterministic random graphs: binary adjacency (dst, src) with edge weights 'w'.
    edge_mask = (jax.random.uniform(k_mask, (G, N, N)) < 0.2).astype(jnp.float32)
    edge_w = jax.random.uniform(k_adj, (G, N, N), jnp.float32, 0.1, 1.0)
    adj_w = edge_mask * edge_w                          # A_w[g, i, j] = weight of edge j->i

    out_degs = jnp.maximum(edge_mask.sum(axis=1), 1.0)  # out_degree of src node j
    in_degs = jnp.maximum(edge_mask.sum(axis=2), 1.0)   # in_degree of dst node i
    out_norm = (out_degs ** -0.5).reshape(G, N, 1).astype(jnp.float32)
    in_norm = (in_degs ** -0.5).reshape(G, N, 1).astype(jnp.float32)

    out = gcn_layer(feats, fc_w, fc_b, adj_w, out_norm, in_norm, weight, bias)
    out = jax.block_until_ready(out)

    ref = jnp.stack([
        reference_single(feats[gi], fc_w, fc_b, adj_w[gi],
                         out_norm[gi], in_norm[gi], weight, bias)
        for gi in range(G)
    ])
    assert out.shape == (G, N, C, D)
    max_err = float(jnp.max(jnp.abs(out - ref)))
    assert jnp.allclose(out, ref, rtol=1e-4, atol=1e-3), max_err

    print("KERNEL_OK")
</pallas_src>

<mosaic_0001>
module attributes {stable_mosaic.version = 11 : i64} {
  func.func @gcn_kernel(%arg0: i32, %arg1: memref<1x64x256xf32, #tpu.memory_space<vmem>>, %arg2: memref<256x256xf32, #tpu.memory_space<vmem>>, %arg3: memref<1x256xf32, #tpu.memory_space<vmem>>, %arg4: memref<1x64x64xf32, #tpu.memory_space<vmem>>, %arg5: memref<1x64x1xf32, #tpu.memory_space<vmem>>, %arg6: memref<1x64x1xf32, #tpu.memory_space<vmem>>, %arg7: memref<1x256xf32, #tpu.memory_space<vmem>>, %arg8: memref<1x64x256xf32, #tpu.memory_space<vmem>>) attributes {dimension_semantics = [#tpu.dimension_semantics<parallel>], iteration_bounds = array<i64: 2>, scalar_prefetch = 0 : i64, scratch_operands = 0 : i64, tpu.core_type = #tpu.core_type<tc>, window_params = [{transform_indices = @transform_0, window_bounds = array<i64: 1, 64, 256>}, {pipeline_mode = #tpu.pipeline_mode<synchronous>, transform_indices = @transform_1, window_bounds = array<i64: 256, 256>}, {pipeline_mode = #tpu.pipeline_mode<synchronous>, transform_indices = @transform_2, window_bounds = array<i64: 1, 256>}, {transform_indices = @transform_3, window_bounds = array<i64: 1, 64, 64>}, {transform_indices = @transform_4, window_bounds = array<i64: 1, 64, 1>}, {transform_indices = @transform_5, window_bounds = array<i64: 1, 64, 1>}, {pipeline_mode = #tpu.pipeline_mode<synchronous>, transform_indices = @transform_6, window_bounds = array<i64: 1, 256>}, {transform_indices = @transform_7, window_bounds = array<i64: 1, 64, 256>}]} {
    %c0 = arith.constant 0 : index
    %c0_0 = arith.constant 0 : index
    %c0_1 = arith.constant 0 : index
    %0 = vector.load %arg1[%c0, %c0_0, %c0_1] : memref<1x64x256xf32, #tpu.memory_space<vmem>>, vector<1x64x256xf32>
    %1 = vector.shape_cast %0 : vector<1x64x256xf32> to vector<64x256xf32>
    %c0_2 = arith.constant 0 : index
    %c0_3 = arith.constant 0 : index
    %2 = vector.load %arg2[%c0_2, %c0_3] : memref<256x256xf32, #tpu.memory_space<vmem>>, vector<256x256xf32>
    %cst = arith.constant dense<0.000000e+00> : vector<64x256xf32>
    %3 = tpu.matmul %1, %2, %cst {dimension_numbers = #tpu.dot_dimension_numbers<[1], [0], [0], [1], [0, 0, 1, 1], [], []>} : vector<64x256xf32>, vector<256x256xf32>, vector<64x256xf32> -> vector<64x256xf32>
    %c0_4 = arith.constant 0 : index
    %c0_5 = arith.constant 0 : index
    %4 = vector.load %arg3[%c0_4, %c0_5] : memref<1x256xf32, #tpu.memory_space<vmem>>, vector<1x256xf32>
    %5 = vector.broadcast %4 : vector<1x256xf32> to vector<64x256xf32>
    %6 = arith.addf %3, %5 : vector<64x256xf32>
    %c0_6 = arith.constant 0 : index
    %c0_7 = arith.constant 0 : index
    %c0_8 = arith.constant 0 : index
    %7 = vector.load %arg5[%c0_6, %c0_7, %c0_8] : memref<1x64x1xf32, #tpu.memory_space<vmem>>, vector<1x64x1xf32>
    %8 = vector.shape_cast %7 : vector<1x64x1xf32> to vector<64x1xf32>
    %9 = vector.broadcast %8 : vector<64x1xf32> to vector<64x256xf32>
    %10 = arith.mulf %6, %9 : vector<64x256xf32>
    %c0_9 = arith.constant 0 : index
    %c0_10 = arith.constant 0 : index
    %c0_11 = arith.constant 0 : index
    %11 = vector.load %arg4[%c0_9, %c0_10, %c0_11] : memref<1x64x64xf32, #tpu.memory_space<vmem>>, vector<1x64x64xf32>
    %12 = vector.shape_cast %11 : vector<1x64x64xf32> to vector<64x64xf32>
    %cst_12 = arith.constant dense<0.000000e+00> : vector<64x256xf32>
    %13 = tpu.matmul %12, %10, %cst_12 {dimension_numbers = #tpu.dot_dimension_numbers<[1], [0], [0], [1], [0, 0, 1, 1], [], []>} : vector<64x64xf32>, vector<64x256xf32>, vector<64x256xf32> -> vector<64x256xf32>
    %c0_13 = arith.constant 0 : index
    %c0_14 = arith.constant 0 : index
    %c0_15 = arith.constant 0 : index
    %14 = vector.load %arg6[%c0_13, %c0_14, %c0_15] : memref<1x64x1xf32, #tpu.memory_space<vmem>>, vector<1x64x1xf32>
    %15 = vector.shape_cast %14 : vector<1x64x1xf32> to vector<64x1xf32>
    %16 = vector.broadcast %15 : vector<64x1xf32> to vector<64x256xf32>
    %17 = arith.mulf %13, %16 : vector<64x256xf32>
    %c0_16 = arith.constant 0 : index
    %c0_17 = arith.constant 0 : index
    %18 = vector.load %arg7[%c0_16, %c0_17] : memref<1x256xf32, #tpu.memory_space<vmem>>, vector<1x256xf32>
    %19 = vector.broadcast %18 : vector<1x256xf32> to vector<64x256xf32>
    %20 = arith.addf %17, %19 : vector<64x256xf32>
    %c0_18 = arith.constant 0 : index
    %c0_19 = arith.constant 0 : index
    %c0_20 = arith.constant 0 : index
    %21 = vector.load %arg8[%c0_18, %c0_19, %c0_20] : memref<1x64x256xf32, #tpu.memory_space<vmem>>, vector<1x64x256xf32>
    %22 = vector.shape_cast %21 : vector<1x64x256xf32> to vector<64x256xf32>
    %23 = vector.shape_cast %20 : vector<64x256xf32> to vector<1x64x256xf32>
    tpu.vector_store %arg8[%c0_18, %c0_19, %c0_20], %23 {strides = array<i32>} : memref<1x64x256xf32, #tpu.memory_space<vmem>>, vector<1x64x256xf32>,
    return
  }
  func.func @transform_0(%arg0: i32) -> (i32, i32, i32) {
    %c0_i32 = arith.constant 0 : i32
    %c0_i32_0 = arith.constant 0 : i32
    %c0_i32_1 = arith.constant 0 : i32
    return %arg0, %c0_i32, %c0_i32_0 : i32, i32, i32
  }
  func.func @transform_1(%arg0: i32) -> (i32, i32) {
    %c0_i32 = arith.constant 0 : i32
    %c0_i32_0 = arith.constant 0 : i32
    %c0_i32_1 = arith.constant 0 : i32
    return %c0_i32, %c0_i32_0 : i32, i32
  }
  func.func @transform_2(%arg0: i32) -> (i32, i32) {
    %c0_i32 = arith.constant 0 : i32
    %c0_i32_0 = arith.constant 0 : i32
    %c0_i32_1 = arith.constant 0 : i32
    return %c0_i32, %c0_i32_0 : i32, i32
  }
  func.func @transform_3(%arg0: i32) -> (i32, i32, i32) {
    %c0_i32 = arith.constant 0 : i32
    %c0_i32_0 = arith.constant 0 : i32
    %c0_i32_1 = arith.constant 0 : i32
    return %arg0, %c0_i32, %c0_i32_0 : i32, i32, i32
  }
  func.func @transform_4(%arg0: i32) -> (i32, i32, i32) {
    %c0_i32 = arith.constant 0 : i32
    %c0_i32_0 = arith.constant 0 : i32
    %c0_i32_1 = arith.constant 0 : i32
    return %arg0, %c0_i32, %c0_i32_0 : i32, i32, i32
  }
  func.func @transform_5(%arg0: i32) -> (i32, i32, i32) {
    %c0_i32 = arith.constant 0 : i32
    %c0_i32_0 = arith.constant 0 : i32
    %c0_i32_1 = arith.constant 0 : i32
    return %arg0, %c0_i32, %c0_i32_0 : i32, i32, i32
  }
  func.func @transform_6(%arg0: i32) -> (i32, i32) {
    %c0_i32 = arith.constant 0 : i32
    %c0_i32_0 = arith.constant 0 : i32
    %c0_i32_1 = arith.constant 0 : i32
    return %c0_i32, %c0_i32_0 : i32, i32
  }
  func.func @transform_7(%arg0: i32) -> (i32, i32, i32) {
    %c0_i32 = arith.constant 0 : i32
    %c0_i32_0 = arith.constant 0 : i32
    %c0_i32_1 = arith.constant 0 : i32
    return %arg0, %c0_i32, %c0_i32_0 : i32, i32, i32
  }
}

</mosaic_0001>

<bundles_post_ra>
// kernel: tpu_custom_call.1
= control target key start
LH: loop header
LB: loop body
LE: loop exit
PB: predicated region body
PF: predicated region fallthrough
CT: control target
= control target key end

     0   :  { %s1674_s0 = inlined_call_operand.vmem [shape: f32[2,64,256], index: 0, kind: input, shape index: {}]   ;;  %s1675_s1 = inlined_call_operand.hbm [shape: f32[256,256], index: 1, kind: input, shape index: {}]   ;;  %s1676_s2 = inlined_call_operand.vmem [shape: f32[1,256], index: 2, kind: input, shape index: {}]   ;;  %s1677_s3 = inlined_call_operand.hbm [shape: f32[2,64,64], index: 3, kind: input, shape index: {}]   ;;  %s1678_s4 = inlined_call_operand.vmem [shape: f32[2,64,1], index: 4, kind: input, shape index: {}]   ;;  %s1679_s5 = inlined_call_operand.vmem [shape: f32[2,64,1], index: 5, kind: input, shape index: {}]   ;;  %s1680_s6 = inlined_call_operand.vmem [shape: f32[1,256], index: 6, kind: input, shape index: {}]   ;;  %s1681_s7 = inlined_call_operand.hbm [shape: f32[2,64,256], index: 7, kind: output, shape index: {}]  }
   0x1   :  { %1682 = sst [smem:[#allocation11_spill]] %s1675_s1 }
   0x2   :  { %12 = vsyncpa [#allocation3], 0 }
   0x3   :  { %13 = vsyncpa [#allocation6], 0 }
   0x4   :  { %15 = vsyncpa [#allocation6 + $0x1], 0 }
   0x5   :  { %16 = vsyncpa [#allocation4], 0 }
   0x6   :  { %18 = vsyncpa [#allocation4 + $0x1], 0  ;;  %s1366_s24 = smov 0   ;;  %s1368_s25 = smov 0  }
   0x7   :  { %s1370_s26 = smov 0   ;;  %s1372_s27 = smov 0  }
   0x8 LB: > { %s1387_s28 = sadd.s32 4294967295, %s1316_s27   ;;  %s1044_s29 = sadd.s32 4294967294, %s1316_s27   ;;  %s1316_s27 = sphi %s1372_s27, %s1693_s27   ;;  %s1312_s26 = sphi %s1370_s26, %s1692_s26   ;;  %s1308_s25 = sphi %s1368_s25, %s1691_s25   ;;  %s1304_s24 = sphi %s1366_s24, %s1690_s24  }
   0x9   : > { %p112_p0 = scmp.ne.s32.totalorder %s1308_s25, %s1304_s24  ;;  %p113_p1 = scmp.eq.s32.totalorder %s1387_s28, 0 }
   0xa   : > { %p209_p2 = scmp.eq.s32.totalorder %s1387_s28, 1  ;;  %p215_p3 = scmp.eq.s32.totalorder %s1044_s29, 1 }
   0xb   : > { %p1396_p4 = por %p113_p1, %p112_p0  ;;  %p1045_p5 = scmp.ge.s32.totalorder %s1316_s27, 1 }
   0xc   : > { %p1401_p6 = por %p215_p3, %p112_p0  ;;  %p222_p7 = scmp.lt.s32.totalorder %s1316_s27, 3 }
   0xd   : > { %s1685_s1 = sld [smem:[#allocation11_spill]]  ;;  %s1318_s13 = smov [#allocation2]  }
   0xe   : > { %p1409_p8 = pnand %p1045_p5, %p222_p7  ;;  %s235_s14 = sshll.u32 %s1318_s13, 4  ;;  %s236_s14 = int_to_ptr.vmem [resolvable:$true] %s235_s14 }
   0xf   : > { %s1419_s15 = sadd.s32 1, %s1316_s27   ;;  %s1319_s16 = smov 256  }
  0x10   : > { %p1127_p9 = pneg %p1409_p8  ;;  %s1320_s17 = smov 16  }
  0x11   : > { %s96_s18 = ssub.s32 %s1316_s27, %s1419_s15  ;;  %s99_s19 = sadd.s32 1, %s1312_s26 }
  0x12   : > { %p1128_p10 = pnand %p1127_p9, %p113_p1  ;;  %p97_p12 = scmp.eq.s32.totalorder %s96_s18, 0 }
  0x13   : > { %s233_s11 = sshll.u32 %s1685_s1, 4  ;;  %p106_p13 = scmp.ne.s32.totalorder %s1312_s26, %s1308_s25  ;;  %s234_s11 = int_to_ptr.hbm [resolvable:$true] %s233_s11 }
  0x14   : > { %1130 = dma.hbm_to_vmem [thread:$0]  (!%p1128_p10), %s234_s11, 8192, %s236_s14, [#allocation3], %s1319_s16, %s1319_s16, %s1320_s17  }
  0x15   : > { %p107_p0 = scmp.eq.s32.totalorder %s1316_s27, 0  ;;  %p1140_p3 = scmp.lt.s32.totalorder %s1316_s27, 2 }
  0x16   : > { %s1429_s20 = scalar_select %p97_p12, %s1312_s26, %s99_s19  }
  0x17   : > { %p108_p5 = por %p107_p0, %p106_p13  ;;  %p1433_p7 = por %p209_p2, %p106_p13 }
  0x18   : > { %s263_s22 = sand.u32 1, %s1312_s26   ;;  %s1082_s23 = sshll.u32 %s1316_s27, 6 }
  0x19   : > { %s1048_s29 = sshll.u32 %s263_s22, 6  ;;  %s272_s11 = scalar_lea.hbm %s1677_s3, %s1082_s23 }
  0x1a   : > { %s273_s13 = sshll.u32 %s272_s11, 4  ;;  %s267_s14 = scalar_lea.vmem [#allocation5], %s1048_s29  ;;  %s274_s13 = int_to_ptr.hbm [resolvable:$true] %s273_s13 }
  0x1b   : > { %s275_s16 = sshll.u32 %s267_s14, 4  ;;  %p1444_p9 = pnand %p1140_p3, %p108_p5  ;;  %s276_s16 = int_to_ptr.vmem [resolvable:$true] %s275_s16 }
  0x1c   : > { %s264_s18 = scalar_lea.sflag [#allocation6], %s263_s22  ;;  %s1216_s19 = sshra.s32 %s274_s13, 4  ;;  %s1217_s19 = int_to_ptr.hbm [resolvable:$true] %s1216_s19 }
  0x1d   : > { %s1218_s1 = scalar_lea.hbm %s1217_s19, 64  ;;  %p1220_p10 = pneg %p1444_p9 }
  0x1e   : > { %p1219_p2 = scmp.ne.s32.totalorder %s1217_s19, %s1218_s1  ;;  %s1223_s9 = scalar_lea.hbm %s1677_s3, 128 }
  0x1f   : > { %p1224_p0 = scmp.lt.s32.totalorder %s1217_s19, %s1677_s3  ;;  %p1225_p3 = scmp.lt.s32.totalorder %s1223_s9, %s1218_s1 }
  0x20   : > { %p1221_p12 = pnand %p1220_p10, %p1219_p2 }
  0x21   : > { %p1226_p5 = por %p1225_p3, %p1224_p0 }
  0x22   : > { %p1222_p13 = pneg %p1221_p12 }
  0x24   : > { %p1227_p11 = pnand %p1226_p5, %p1222_p13 }
  0x26   : > { %1230 = shalt.err (!%p1227_p11)
}
  0x27   : > { %s1321_s22 = smov 128   ;;  %s1322_s14 = smov 8  }
  0x28   : > { %1134 = dma.hbm_to_vmem [thread:$0]  (!%p1444_p9), %s274_s13, 1024, %s276_s16, %s264_s18, %s1321_s22, %s1321_s22, %s1322_s14  }
  0x29   : > { %303 = sbr.rel (%p1409_p8) target bundleno = 514 (0x202), region = 48 }
  0x2e   : > { %1291 = dma.done.wait (%p113_p1), [#allocation3], 8192  }
  0x2f   : > { %1293 = vsyncadd (%p113_p1), [#allocation3], 4294959104  ;;  %s1465_s1 = sand.u32 1, %s1308_s25  }
  0x30   : > { %s1053_s19 = sshll.u32 %s1465_s1, 6  ;;  %s311_s23 = scalar_lea.sflag [#allocation6], %s1465_s1 }
  0x31   : > { %s1469_s29 = scalar_lea.vmem [#allocation5], %s1053_s19 }
  0x32   : > { %1295 = dma.done.wait (%p1396_p4), %s311_s23, 1024  }
  0x33   : > { %1297 = vsyncadd (%p1396_p4), %s311_s23, 4294966272  ;;  %v422_v0 = vld [vmem:[#allocation2 + $0xf0] sm:$0xff]  ;;  %v420_v1 = vld [vmem:[#allocation2 + $0xe0] sm:$0xff]  ;;  %p361_p1 = scmp.lt.s32.totalorder %s1387_s28, 1  ;;  %v1323_v36 = vmov 0   ;;  %vm698_vm0 = vcmask 523264  }
  0x34   : > { %v454_v2 = vld [vmem:[#allocation2 + $0x1f0] sm:$0xff]  ;;  %1087 = vmatpush.msra.mxu2 %v422_v0  ;;  %v452_v3 = vld [vmem:[#allocation2 + $0x1e0] sm:$0xff]  ;;  %462 = vmatpush.msra.mxu0 %v422_v0  ;;  %v423_v34 = vld [vmem:[#allocation2 + $0xf8] sm:$0xff]  ;;  %s1086_s17 = sshll.u32 %s1387_s28, 7  ;;  %s908_s14 = scalar_lea.sflag [#allocation4], %s1465_s1 }
  0x35   : > { %1103 = vmatpush.msra.mxu3 %v454_v2  ;;  %v418_v4 = vld [vmem:[#allocation2 + $0xd0] sm:$0xff]  ;;  %503 = vmatpush.msra.mxu1 %v454_v2  ;;  %v416_v6 = vld [vmem:[#allocation2 + $0xc0] sm:$0xff]  ;;  %s1477_s30 = scalar_select %p361_p1, %s1387_s28, 1  ;;  %v455_v35 = vld [vmem:[#allocation2 + $0x1f8] sm:$0xff] }
  0x36   : > { %v450_v5 = vld [vmem:[#allocation2 + $0x1d0] sm:$0xff]  ;;  %1088 = vmatpush.msra.mxu2 %v420_v1  ;;  %v448_v7 = vld [vmem:[#allocation2 + $0x1c0] sm:$0xff]  ;;  %463 = vmatpush.msra.mxu0 %v420_v1  ;;  %v421_v38 = vld [vmem:[#allocation2 + $0xe8] sm:$0xff]  ;;  %s919_s10 = scalar_lea.hbm %s1681_s7, %s1086_s17 }
  0x37   : > { %1104 = vmatpush.msra.mxu3 %v452_v3  ;;  %504 = vmatpush.msra.mxu1 %v452_v3  ;;  %v414_v8 = vld [vmem:[#allocation2 + $0xb0] sm:$0xff]  ;;  %v412_v10 = vld [vmem:[#allocation2 + $0xa0] sm:$0xff]  ;;  %s1083_s12 = sshll.u32 %s1477_s30, 7  ;;  %s1084_s13 = sshll.u32 %s1477_s30, 6  ;;  %v453_v39 = vld [vmem:[#allocation2 + $0x1e8] sm:$0xff] }
  0x38   : > { %1089 = vmatpush.msra.mxu2 %v418_v4  ;;  %v446_v9 = vld [vmem:[#allocation2 + $0x1b0] sm:$0xff]  ;;  %464 = vmatpush.msra.mxu0 %v418_v4  ;;  %v444_v11 = vld [vmem:[#allocation2 + $0x1a0] sm:$0xff]  ;;  %s1484_s18 = scalar_lea.vmem %s1674_s0, %s1083_s12  ;;  %s1491_s11 = scalar_lea.vmem %s1678_s4, %s1084_s13  ;;  %v419_v41 = vld [vmem:[#allocation2 + $0xd8] sm:$0xff] }
  0x39   : > { %1105 = vmatpush.msra.mxu3 %v450_v5  ;;  %505 = vmatpush.msra.mxu1 %v450_v5  ;;  %v410_v12 = vld [vmem:[#allocation2 + $0x90] sm:$0xff]  ;;  %v408_v14 = vld [vmem:[#allocation2 + $0x80] sm:$0xff]  ;;  %v1497_v33 = vld [vmem:[%s1484_s18 + $0x48] sm:$0xff]  ;;  %s375_s19 = scalar_lea.vmem %s1679_s5, %s1084_s13  ;;  %s1054_s13 = sshll.u32 %s1465_s1, 7 }
  0x3a   : > { %1090 = vmatpush.msra.mxu2 %v416_v6  ;;  %465 = vmatpush.msra.mxu0 %v416_v6  ;;  %v442_v13 = vld [vmem:[#allocation2 + $0x190] sm:$0xff]  ;;  %v440_v15 = vld [vmem:[#allocation2 + $0x180] sm:$0xff]  ;;  %v631_v37 = vld [vmem:[%s1491_s11 + $0x28] sm:$0xff]  ;;  %s1622_s16 = scalar_lea.vmem [#allocation7], %s1054_s13  ;;  %s922_s22 = sshll.u32 %s919_s10, 4  ;;  %s923_s22 = int_to_ptr.hbm [resolvable:$true] %s922_s22 }
  0x3b   : > { %1106 = vmatpush.msra.mxu3 %v448_v7  ;;  %506 = vmatpush.msra.mxu1 %v448_v7  ;;  %v406_v16 = vld [vmem:[#allocation2 + $0x70] sm:$0xff]  ;;  %v404_v18 = vld [vmem:[#allocation2 + $0x60] sm:$0xff]  ;;  %v451_v42 = vld [vmem:[#allocation2 + $0x1d8] sm:$0xff] }
  0x3c   : > { %1091 = vmatpush.msra.mxu2 %v414_v8  ;;  %466 = vmatpush.msra.mxu0 %v414_v8  ;;  %v438_v17 = vld [vmem:[#allocation2 + $0x170] sm:$0xff]  ;;  %v436_v19 = vld [vmem:[#allocation2 + $0x160] sm:$0xff]  ;;  %v417_v43 = vld [vmem:[#allocation2 + $0xc8] sm:$0xff] }
  0x3d   : > { %1107 = vmatpush.msra.mxu3 %v446_v9  ;;  %507 = vmatpush.msra.mxu1 %v446_v9  ;;  %v402_v20 = vld [vmem:[#allocation2 + $0x50] sm:$0xff]  ;;  %v400_v22 = vld [vmem:[#allocation2 + $0x40] sm:$0xff]  ;;  %v449_v44 = vld [vmem:[#allocation2 + $0x1c8] sm:$0xff] }
  0x3e   : > { %1092 = vmatpush.msra.mxu2 %v412_v10  ;;  %467 = vmatpush.msra.mxu0 %v412_v10  ;;  %v434_v21 = vld [vmem:[#allocation2 + $0x150] sm:$0xff]  ;;  %v432_v23 = vld [vmem:[#allocation2 + $0x140] sm:$0xff]  ;;  %v1510_v46 = vld [vmem:[%s1484_s18 + $0x58] sm:$0xff] }
  0x3f   : > { %1108 = vmatpush.msra.mxu3 %v444_v11  ;;  %508 = vmatpush.msra.mxu1 %v444_v11  ;;  %v398_v24 = vld [vmem:[#allocation2 + $0x30] sm:$0xff]  ;;  %v396_v26 = vld [vmem:[#allocation2 + $0x20] sm:$0xff]  ;;  %v415_v47 = vld [vmem:[#allocation2 + $0xb8] sm:$0xff] }
  0x40   : > { %1093 = vmatpush.msra.mxu2 %v410_v12  ;;  %468 = vmatpush.msra.mxu0 %v410_v12  ;;  %v430_v25 = vld [vmem:[#allocation2 + $0x130] sm:$0xff]  ;;  %v428_v27 = vld [vmem:[#allocation2 + $0x120] sm:$0xff]  ;;  %v447_v48 = vld [vmem:[#allocation2 + $0x1b8] sm:$0xff] }
  0x41   : > { %1109 = vmatpush.msra.mxu3 %v442_v13  ;;  %509 = vmatpush.msra.mxu1 %v442_v13  ;;  %v394_v28 = vld [vmem:[#allocation2 + $0x10] sm:$0xff]  ;;  %v392_v30 = vld [vmem:[#allocation2] sm:$0xff]  ;;  %v1513_v49 = vld [vmem:[%s1484_s18 + $0x8] sm:$0xff] }
  0x42   : > { %1094 = vmatpush.msra.mxu2 %v408_v14  ;;  %469 = vmatpush.msra.mxu0 %v408_v14  ;;  %v426_v29 = vld [vmem:[#allocation2 + $0x110] sm:$0xff]  ;;  %v424_v31 = vld [vmem:[#allocation2 + $0x100] sm:$0xff]  ;;  %v413_v51 = vld [vmem:[#allocation2 + $0xa8] sm:$0xff] }
  0x43   : > { %1110 = vmatpush.msra.mxu3 %v440_v15  ;;  %510 = vmatpush.msra.mxu1 %v440_v15  ;;  %v1494_v32 = vld [vmem:[%s1484_s18 + $0x40] sm:$0xff]  ;;  %v1507_v45 = vld [vmem:[%s1484_s18 + $0x50] sm:$0xff]  ;;  %v445_v52 = vld [vmem:[#allocation2 + $0x1a8] sm:$0xff] }
  0x44   : > { %1095 = vmatpush.msra.mxu2 %v406_v16  ;;  %470 = vmatpush.msra.mxu0 %v406_v16  ;;  %v1503_v40 = vld [vmem:[%s1484_s18] sm:$0xff]  ;;  %v1519_v53 = vld [vmem:[%s1484_s18 + $0x10] sm:$0xff]  ;;  %v633_v54 = vld [vmem:[%s1491_s11 + $0x38] sm:$0xff] }
  0x45   : > { %1111 = vmatpush.msra.mxu3 %v438_v17  ;;  %511 = vmatpush.msra.mxu1 %v438_v17  ;;  %v630_v50 = vld [vmem:[%s1491_s11 + $0x20] sm:$0xff]  ;;  %v411_v55 = vld [vmem:[#allocation2 + $0x98] sm:$0xff]  ;;  %v409_v57 = vld [vmem:[#allocation2 + $0x88] sm:$0xff] }
  0x46   : > { %1096 = vmatpush.msra.mxu2 %v404_v18  ;;  %471 = vmatpush.msra.mxu0 %v404_v18  ;;  %v443_v56 = vld [vmem:[#allocation2 + $0x198] sm:$0xff]  ;;  %v441_v58 = vld [vmem:[#allocation2 + $0x188] sm:$0xff]  ;;  %v1525_v59 = vld [vmem:[%s1484_s18 + $0x60] sm:$0xff] }
  0x47   : > { %1112 = vmatpush.msra.mxu3 %v436_v19  ;;  %512 = vmatpush.msra.mxu1 %v436_v19  ;;  %v1528_v60 = vld [vmem:[%s1484_s18 + $0x68] sm:$0xff]  ;;  %v407_v61 = vld [vmem:[#allocation2 + $0x78] sm:$0xff]  ;;  %v626_v2 = vld [vmem:[%s1491_s11] sm:$0xff] }
  0x48   : > { %1097 = vmatpush.msra.mxu2 %v402_v20  ;;  %472 = vmatpush.msra.mxu0 %v402_v20  ;;  %v439_v62 = vld [vmem:[#allocation2 + $0x178] sm:$0xff]  ;;  %v405_v0 = vld [vmem:[#allocation2 + $0x68] sm:$0xff]  ;;  %v380_v3 = vld [vmem:[%s1484_s18 + $0x20] sm:$0xff] }
  0x49   : > { %1113 = vmatpush.msra.mxu3 %v434_v21  ;;  %513 = vmatpush.msra.mxu1 %v434_v21  ;;  %v379_v63 = vld [vmem:[%s1484_s18 + $0x18] sm:$0xff]  ;;  %v437_v1 = vld [vmem:[#allocation2 + $0x168] sm:$0xff]  ;;  %v632_v4 = vld [vmem:[%s1491_s11 + $0x30] sm:$0xff] }
  0x4a   : > { %1098 = vmatpush.msra.mxu2 %v400_v22  ;;  %473 = vmatpush.msra.mxu0 %v400_v22  ;;  %v403_v5 = vld [vmem:[#allocation2 + $0x58] sm:$0xff]  ;;  %v401_v7 = vld [vmem:[#allocation2 + $0x48] sm:$0xff]  ;;  %v390_v9 = vld [vmem:[%s1484_s18 + $0x70] sm:$0xff] }
  0x4b   : > { %1114 = vmatpush.msra.mxu3 %v432_v23  ;;  %514 = vmatpush.msra.mxu1 %v432_v23  ;;  %v435_v6 = vld [vmem:[#allocation2 + $0x158] sm:$0xff]  ;;  %v433_v8 = vld [vmem:[#allocation2 + $0x148] sm:$0xff]  ;;  %v382_v16 = vld [vmem:[%s1484_s18 + $0x30] sm:$0xff] }
  0x4c   : > { %1099 = vmatpush.msra.mxu2 %v398_v24  ;;  %474 = vmatpush.msra.mxu0 %v398_v24  ;;  %v391_v10 = vld [vmem:[%s1484_s18 + $0x78] sm:$0xff]  ;;  %v381_v13 = vld [vmem:[%s1484_s18 + $0x28] sm:$0xff]  ;;  %v628_v24 = vld [vmem:[%s1491_s11 + $0x10] sm:$0xff] }
  0x4d   : > { %1115 = vmatpush.msra.mxu3 %v430_v25  ;;  %515 = vmatpush.msra.mxu1 %v430_v25  ;;  %v399_v11 = vld [vmem:[#allocation2 + $0x38] sm:$0xff]  ;;  %v397_v14 = vld [vmem:[#allocation2 + $0x28] sm:$0xff] }
  0x4e   : > { %1100 = vmatpush.msra.mxu2 %v396_v26  ;;  %475 = vmatpush.msra.mxu0 %v396_v26  ;;  %v431_v12 = vld [vmem:[#allocation2 + $0x138] sm:$0xff]  ;;  %v429_v15 = vld [vmem:[#allocation2 + $0x128] sm:$0xff]  ;;  %v807_v26 = vld [vmem:[%s375_s19 + $0x10] sm:$0xff] }
  0x4f   : > { %1116 = vmatpush.msra.mxu3 %v428_v27  ;;  %516 = vmatpush.msra.mxu1 %v428_v27  ;;  %v627_v17 = vld [vmem:[%s1491_s11 + $0x8] sm:$0xff]  ;;  %v395_v18 = vld [vmem:[#allocation2 + $0x18] sm:$0xff]  ;;  %v809_v27 = vld [vmem:[%s375_s19 + $0x20] sm:$0xff] }
  0x50   : > { %1101 = vmatpush.msra.mxu2 %v394_v28  ;;  %476 = vmatpush.msra.mxu0 %v394_v28  ;;  %v427_v19 = vld [vmem:[#allocation2 + $0x118] sm:$0xff]  ;;  %v393_v20 = vld [vmem:[#allocation2 + $0x8] sm:$0xff] }
  0x51   : > { %1117 = vmatpush.msra.mxu3 %v426_v29  ;;  %1184 = vset.pattern.permute.xlu1 %v1323_v36  ;;  %v425_v21 = vld [vmem:[#allocation2 + $0x108] sm:$0xff]  ;;  %v383_v22 = vld [vmem:[%s1484_s18 + $0x38] sm:$0xff] }
  0x52   : > { %1102 = vmatpush.msra.mxu2 %v392_v30  ;;  %661 = vperm.xlu1 %1184, %v631_v37   ;;  %v629_v23 = vld [vmem:[%s1491_s11 + $0x18] sm:$0xff]  ;;  %v806_v25 = vld [vmem:[%s375_s19 + $0x8] sm:$0xff]  ;;  %s920_s11 = sshll.u32 %s1622_s16, 4  ;;  %s921_s11 = int_to_ptr.vmem [resolvable:$true] %s920_s11 }
  0x53   : > { %1118 = vmatpush.msra.mxu3 %v424_v31  ;;  %490 = vmatmul.f32.vlgmr.msra.gmra.mxu2 %v1494_v32  ;;  %v810_v28 = vld [vmem:[%s375_s19 + $0x28] sm:$0xff] }
  0x54   : > { %531 = vmatmul.f32.vlgmr.msra.gmra.mxu3 %v1497_v33  ;;  %544 = vmatpush.msrb.mxu2 %v423_v34 }
  0x55   : > { %585 = vmatpush.msrb.mxu3 %v455_v35  ;;  %477 = vmatpush.msra.mxu0 %v392_v30  ;;  %v805_v30 = vld [vmem:[%s375_s19] sm:$0xff] }
  0x56   : > { %545 = vmatpush.msrb.mxu2 %v421_v38  ;;  %517 = vmatpush.msra.mxu1 %v426_v29  ;;  %v812_v29 = vld [vmem:[%s375_s19 + $0x38] sm:$0xff] }
  0x57   : > { %586 = vmatpush.msrb.mxu3 %v453_v39  ;;  %478 = vmatmul.f32.vlgmr.msra.gmra.mxu0 %v1503_v40 }
  0x58   : > { %546 = vmatpush.msrb.mxu2 %v419_v41  ;;  %518 = vmatpush.msra.mxu1 %v424_v31  ;;  %v808_v31 = vld [vmem:[%s375_s19 + $0x18] sm:$0xff] }
  0x59   : > { %587 = vmatpush.msrb.mxu3 %v451_v42  ;;  %1183 = vset.pattern.permute.xlu0 %v1323_v36 }
  0x5a   : > { %547 = vmatpush.msrb.mxu2 %v417_v43  ;;  %519 = vmatmul.f32.vlgmr.msra.gmra.mxu1 %v1513_v49 }
  0x5b   : > { %588 = vmatpush.msrb.mxu3 %v449_v44  ;;  %493 = vmatmul.f32.gmra.mxu2 %v1507_v45 }
  0x5c   : > { %534 = vmatmul.f32.gmra.mxu3 %v1510_v46  ;;  %548 = vmatpush.msrb.mxu2 %v415_v47 }
  0x5d   : > { %589 = vmatpush.msrb.mxu3 %v447_v48  ;;  %656 = vperm.xlu1 %1184, %v630_v50  }
  0x5e   : > { %549 = vmatpush.msrb.mxu2 %v413_v51  ;;  %671 = vperm.xlu0 %1183, %v633_v54  }
  0x5f   : > { %590 = vmatpush.msrb.mxu3 %v445_v52  ;;  %481 = vmatmul.f32.gmra.mxu0 %v1519_v53 }
  0x60   : > { %550 = vmatpush.msrb.mxu2 %v411_v55  ;;  %1185 = vset.pattern.permute.xlu2 %v1323_v36 }
  0x61   : > { %591 = vmatpush.msrb.mxu3 %v443_v56  ;;  %651 = vperm.xlu2 %1185, %v629_v23  }
  0x62   : > { %551 = vmatpush.msrb.mxu2 %v409_v57  ;;  %522 = vmatmul.f32.gmra.mxu1 %v379_v63 }
  0x63   : > { %592 = vmatpush.msrb.mxu3 %v441_v58  ;;  %496 = vmatmul.f32.gmra.mxu2 %v1525_v59 }
  0x64   : > { %537 = vmatmul.f32.gmra.mxu3 %v1528_v60  ;;  %552 = vmatpush.msrb.mxu2 %v407_v61 }
  0x65   : > { %593 = vmatpush.msrb.mxu3 %v439_v62  ;;  %636 = vperm.xlu1 %1184, %v626_v2  }
  0x66   : > { %553 = vmatpush.msrb.mxu2 %v405_v0  ;;  %666 = vperm.xlu0 %1183, %v632_v4  }
  0x67   : > { %594 = vmatpush.msrb.mxu3 %v437_v1  ;;  %484 = vmatmul.f32.gmra.mxu0 %v380_v3 }
  0x68   : > { %554 = vmatpush.msrb.mxu2 %v403_v5 }
  0x69   : > { %595 = vmatpush.msrb.mxu3 %v435_v6  ;;  %646 = vperm.xlu2 %1185, %v628_v24  }
  0x6a   : > { %555 = vmatpush.msrb.mxu2 %v401_v7  ;;  %525 = vmatmul.f32.gmra.mxu1 %v381_v13 }
  0x6b   : > { %596 = vmatpush.msrb.mxu3 %v433_v8  ;;  %499 = vmatmul.f32.gmra.mxu2 %v390_v9 }
  0x6c   : > { %540 = vmatmul.f32.gmra.mxu3 %v391_v10  ;;  %556 = vmatpush.msrb.mxu2 %v399_v11 }
  0x6d   : > { %597 = vmatpush.msrb.mxu3 %v431_v12  ;;  %825 = vperm.xlu1 %1184, %v807_v26  }
  0x6e   : > { %557 = vmatpush.msrb.mxu2 %v397_v14  ;;  %641 = vperm.xlu0 %1183, %v627_v17  }
  0x6f   : > { %598 = vmatpush.msrb.mxu3 %v429_v15  ;;  %487 = vmatmul.f32.gmra.mxu0 %v382_v16 }
  0x70   : > { %558 = vmatpush.msrb.mxu2 %v395_v18 }
  0x71   : > { %599 = vmatpush.msrb.mxu3 %v427_v19  ;;  %815 = vperm.xlu2 %1185, %v805_v30  }
  0x72   : > { %559 = vmatpush.msrb.mxu2 %v393_v20  ;;  %528 = vmatmul.f32.gmra.mxu1 %v383_v22 }
  0x73   : > { %600 = vmatpush.msrb.mxu3 %v425_v21  ;;  %560 = vmatmul.f32.vlgmr.msrb.gmra.mxu2 %v1503_v40 }
  0x74   : > { %601 = vmatmul.f32.vlgmr.msrb.gmra.mxu3 %v1513_v49 }
  0x75   : > { %840 = vperm.xlu1 %1184, %v810_v28  }
  0x76   : > { %820 = vperm.xlu0 %1183, %v806_v25  }
  0x79   : > { %830 = vperm.xlu2 %1185, %v808_v31  }
  0x7b   : > { %563 = vmatmul.f32.gmra.mxu2 %v1519_v53 }
  0x7c   : > { %604 = vmatmul.f32.gmra.mxu3 %v379_v63 }
  0x7e   : > { %835 = vperm.xlu0 %1183, %v809_v27  }
  0x83   : > { %566 = vmatmul.f32.gmra.mxu2 %v380_v3 }
  0x84   : > { %607 = vmatmul.f32.gmra.mxu3 %v381_v13 }
  0x86   : > { %850 = vperm.xlu0 %1183, %v812_v29   ;;  %v690_v29 = vld [vmem:[%s1469_s29] sm:$0xff] }
  0x8b   : > { %569 = vmatmul.f32.gmra.mxu2 %v382_v16 }
  0x8c   : > { %610 = vmatmul.f32.gmra.mxu3 %v383_v22 }
  0x93   : > { %572 = vmatmul.f32.gmra.mxu2 %v1494_v32  ;;  %v811_v32 = vld [vmem:[%s375_s19 + $0x30] sm:$0xff]  ;;  %s1260_s19 = sshra.s32 %s923_s22, 4  ;;  %s1261_s19 = int_to_ptr.hbm [resolvable:$true] %s1260_s19 }
  0x94   : > { %613 = vmatmul.f32.gmra.mxu3 %v1497_v33  ;;  %845 = vperm.xlu2 %1185, %v811_v32   ;;  %s1262_s23 = scalar_lea.hbm %s1261_s19, 128  ;;  %p1267_p9 = scmp.lt.s32.totalorder %s1261_s19, %s1681_s7 }
  0x95   : > { %p1263_p4 = scmp.ne.s32.totalorder %s1261_s19, %s1262_s23 }
  0x97   : > { %p1264_p8 = pnand %p1263_p4, %p1433_p7 }
  0x99   : > { %p1265_p11 = pneg %p1264_p8 }
  0x9b   : > { %575 = vmatmul.f32.gmra.mxu2 %v1507_v45  ;;  %v456_v45 = vld [vmem:[%s1676_s2] sm:$0x3] }
  0x9c   : > { %616 = vmatmul.f32.gmra.mxu3 %v1510_v46  ;;  %v458_v48 = vperm.slane %v456_v45, 0  ;;  %v1572_v2 = vperm.slane %v456_v45, 1 }
  0xa3   : > { %578 = vmatmul.f32.gmra.mxu2 %v1525_v59 }
  0xa4   : > { %619 = vmatmul.f32.gmra.mxu3 %v1528_v60 }
  0xab   : > { %581 = vmatmul.f32.gmra.mxu2 %v390_v9 }
  0xac   : > { %622 = vmatmul.f32.gmra.mxu3 %v391_v10 }
  0xbb   : > { %v1565_v50 = vpop.permute.xlu2 %651 }
  0xc3   : > { %v647_v14 = vpop.permute.xlu2 %646 }
  0xc4   : > { %v1558_v42 = vpop.permute.xlu1 %661 }
  0xcf   : > { %v1567_v56 = vpop.permute.xlu1 %656 }
  0xd0   : > { %v1563_v46 = vpop.permute.xlu0 %671 }
  0xd4   : > { %v479_v33 = vpop.f32.mrf.mxu0 }
  0xd5   : > { %v480_v9 = vadd.f32 %v479_v33, %v458_v48 }
  0xd6   : > { %v491_v34 = vpop.f32.mrf.mxu2 }
  0xd7   : > { %v532_v35 = vpop.f32.mrf.mxu3  ;;  %v520_v36 = vpop.f32.mrf.mxu1  ;;  %v492_v57 = vadd.f32 %v491_v34, %v458_v48 }
  0xd8   : > { %v1569_v61 = vpop.permute.xlu0 %666  ;;  %v637_v13 = vpop.permute.xlu1 %636  ;;  %v521_v20 = vadd.f32 %v520_v36, %v480_v9 }
  0xd9   : > { %v533_v3 = vadd.f32 %v532_v35, %v492_v57  ;;  %v691_v35 = vld [vmem:[%s1469_s29 + $0x8] sm:$0xff] }
  0xda   : > { %v674_v27 = vmul.f32 %v637_v13, %v521_v20 }
  0xdb   : > { %v682_v17 = vmul.f32 %v1567_v56, %v533_v3 }
  0xdc   : > { %v482_v37 = vpop.f32.mrf.mxu0 }
  0xdd   : > { %v483_v4 = vadd.f32 %v482_v37, %v458_v48 }
  0xde   : > { %v494_v38 = vpop.f32.mrf.mxu2 }
  0xdf   : > { %v535_v39 = vpop.f32.mrf.mxu3  ;;  %v523_v40 = vpop.f32.mrf.mxu1  ;;  %v495_v54 = vadd.f32 %v494_v38, %v458_v48 }
  0xe0   : > { %v524_v15 = vadd.f32 %v523_v40, %v483_v4  ;;  %v642_v19 = vpop.permute.xlu0 %641 }
  0xe1   : > { %v536_v63 = vadd.f32 %v535_v39, %v495_v54 }
  0xe2   : > { %v676_v23 = vmul.f32 %v642_v19, %v524_v15 }
  0xe3   : > { %v684_v12 = vmul.f32 %v1558_v42, %v536_v63 }
  0xe4   : > { %v485_v41 = vpop.f32.mrf.mxu0 }
  0xe5   : > { %v486_v0 = vadd.f32 %v485_v41, %v458_v48  ;;  %v692_v41 = vld [vmem:[%s1469_s29 + $0x10] sm:$0xff] }
  0xe6   : > { %v497_v43 = vpop.f32.mrf.mxu2 }
  0xe7   : > { %v538_v44 = vpop.f32.mrf.mxu3  ;;  %v526_v47 = vpop.f32.mrf.mxu1  ;;  %v498_v49 = vadd.f32 %v497_v43, %v458_v48 }
  0xe8   : > { %v527_v10 = vadd.f32 %v526_v47, %v486_v0 }
  0xe9   : > { %v539_v58 = vadd.f32 %v538_v44, %v498_v49  ;;  %v693_v49 = vld [vmem:[%s1469_s29 + $0x18] sm:$0xff] }
  0xea   : > { %v678_v21 = vmul.f32 %v647_v14, %v527_v10  ;;  %v821_v10 = vpop.permute.xlu0 %820 }
  0xeb   : > { %v686_v5 = vmul.f32 %v1569_v61, %v539_v58 }
  0xec   : > { %v488_v51 = vpop.f32.mrf.mxu0 }
  0xed   : > { %v489_v60 = vadd.f32 %v488_v51, %v458_v48 }
  0xee   : > { %v500_v52 = vpop.f32.mrf.mxu2 }
  0xef   : > { %v541_v53 = vpop.f32.mrf.mxu3  ;;  %v501_v55 = vadd.f32 %v500_v52, %v458_v48  ;;  %v529_v62 = vpop.f32.mrf.mxu1 }
  0xf0   : > { %v530_v6 = vadd.f32 %v529_v62, %v489_v60 }
  0xf1   : > { %v542_v59 = vadd.f32 %v541_v53, %v501_v55 }
  0xf2   : > { %v680_v18 = vmul.f32 %v1565_v50, %v530_v6  ;;  %v697_v6 = vld [vmem:[%s1469_s29 + $0x38] sm:$0xff] }
  0xf3   : > { %v688_v1 = vmul.f32 %v1563_v46, %v542_v59 }
  0xf5   : > { %731 = vmatpush.msrb.mxu0 %v688_v1 }
  0xf6   : > { %v561_v7 = vpop.f32.mrf.mxu2 }
  0xf7   : > { %v602_v8 = vpop.f32.mrf.mxu3  ;;  %v562_v11 = vadd.f32 %v561_v7, %v1572_v2  ;;  %732 = vmatpush.msrb.mxu0 %v686_v5  ;;  %v696_v5 = vld [vmem:[%s1469_s29 + $0x30] sm:$0xff] }
  0xf9   : > { %v603_v16 = vadd.f32 %v602_v8, %v562_v11  ;;  %733 = vmatpush.msrb.mxu0 %v684_v12 }
  0xfb   : > { %734 = vmatpush.msrb.mxu0 %v682_v17  ;;  %v1579_v22 = vmul.f32 %v637_v13, %v603_v16 }
  0xfd   : > { %735 = vmatpush.msrb.mxu0 %v680_v18 }
  0xfe   : > { %v564_v24 = vpop.f32.mrf.mxu2 }
  0xff   : > { %v605_v25 = vpop.f32.mrf.mxu3  ;;  %v565_v26 = vadd.f32 %v564_v24, %v1572_v2  ;;  %736 = vmatpush.msrb.mxu0 %v678_v21 }
 0x101   : > { %v606_v28 = vadd.f32 %v605_v25, %v565_v26  ;;  %737 = vmatpush.msrb.mxu0 %v676_v23 }
 0x103   : > { %738 = vmatpush.msrb.mxu0 %v674_v27  ;;  %v677_v30 = vmul.f32 %v642_v19, %v606_v28 }
 0x104   : > { %1061 = vmatmul.msk.f32.vlgmr.msrb.gmra.mxu0 %vm698_vm0, %v690_v29 }
 0x106   : > { %v567_v31 = vpop.f32.mrf.mxu2 }
 0x107   : > { %v608_v32 = vpop.f32.mrf.mxu3  ;;  %v568_v33 = vadd.f32 %v567_v31, %v1572_v2 }
 0x109   : > { %v609_v34 = vadd.f32 %v608_v32, %v568_v33 }
 0x10b   : > { %v679_v36 = vmul.f32 %v647_v14, %v609_v34  ;;  %v826_v14 = vpop.permute.xlu1 %825 }
 0x10c   : > { %1062 = vmatmul.msk.f32.gmra.mxu0 %vm698_vm0, %v691_v35 }
 0x10e   : > { %v570_v37 = vpop.f32.mrf.mxu2 }
 0x10f   : > { %v611_v38 = vpop.f32.mrf.mxu3  ;;  %v571_v39 = vadd.f32 %v570_v37, %v1572_v2 }
 0x111   : > { %v612_v40 = vadd.f32 %v611_v38, %v571_v39 }
 0x113   : > { %v681_v43 = vmul.f32 %v1565_v50, %v612_v40  ;;  %v694_v50 = vld [vmem:[%s1469_s29 + $0x20] sm:$0xff]  ;;  %v841_v26 = vpop.permute.xlu1 %840 }
 0x114   : > { %1063 = vmatmul.msk.f32.gmra.mxu0 %vm698_vm0, %v692_v41 }
 0x116   : > { %v573_v44 = vpop.f32.mrf.mxu2 }
 0x117   : > { %v614_v45 = vpop.f32.mrf.mxu3  ;;  %v574_v47 = vadd.f32 %v573_v44, %v1572_v2 }
 0x119   : > { %v615_v48 = vadd.f32 %v614_v45, %v574_v47 }
 0x11b   : > { %v683_v51 = vmul.f32 %v1567_v56, %v615_v48  ;;  %v695_v56 = vld [vmem:[%s1469_s29 + $0x28] sm:$0xff]  ;;  %s1266_s29 = scalar_lea.hbm %s1681_s7, 256 }
 0x11c   : > { %1064 = vmatmul.msk.f32.gmra.mxu0 %vm698_vm0, %v693_v49  ;;  %p1268_p2 = scmp.lt.s32.totalorder %s1266_s29, %s1262_s23 }
 0x11e   : > { %v576_v52 = vpop.f32.mrf.mxu2  ;;  %p1269_p10 = por %p1268_p2, %p1267_p9 }
 0x11f   : > { %v617_v53 = vpop.f32.mrf.mxu3  ;;  %v577_v54 = vadd.f32 %v576_v52, %v1572_v2 }
 0x120   : > { %p1270_p12 = pnand %p1269_p10, %p1265_p11 }
 0x121   : > { %v618_v55 = vadd.f32 %v617_v53, %v577_v54 }
 0x123   : > { %v685_v57 = vmul.f32 %v1558_v42, %v618_v55 }
 0x124   : > { %1065 = vmatmul.msk.f32.gmra.mxu0 %vm698_vm0, %v694_v50 }
 0x126   : > { %v579_v58 = vpop.f32.mrf.mxu2 }
 0x127   : > { %v620_v59 = vpop.f32.mrf.mxu3  ;;  %v580_v60 = vadd.f32 %v579_v58, %v1572_v2 }
 0x129   : > { %v621_v62 = vadd.f32 %v620_v59, %v580_v60 }
 0x12b   : > { %v687_v63 = vmul.f32 %v1569_v61, %v621_v62 }
 0x12c   : > { %1066 = vmatmul.msk.f32.gmra.mxu0 %vm698_vm0, %v695_v56 }
 0x12e   : > { %v582_v0 = vpop.f32.mrf.mxu2 }
 0x12f   : > { %v623_v1 = vpop.f32.mrf.mxu3  ;;  %v583_v3 = vadd.f32 %v582_v0, %v1572_v2  ;;  %v816_v2 = vpop.permute.xlu2 %815 }
 0x131   : > { %v624_v4 = vadd.f32 %v623_v1, %v583_v3 }
 0x133   : > { %v689_v42 = vmul.f32 %v1563_v46, %v624_v4  ;;  %v869_v46 = vld [vmem:[%s1680_s6] sm:$0x3] }
 0x134   : > { %1067 = vmatmul.msk.f32.gmra.mxu0 %vm698_vm0, %v696_v5  ;;  %v871_v61 = vperm.slane %v869_v46, 0  ;;  %v872_v38 = vperm.slane %v869_v46, 1 }
 0x135   : > { %772 = vmatpush.msrb.mxu1 %v689_v42 }
 0x137   : > { %773 = vmatpush.msrb.mxu1 %v687_v63  ;;  %v831_v18 = vpop.permute.xlu2 %830 }
 0x139   : > { %774 = vmatpush.msrb.mxu1 %v685_v57 }
 0x13b   : > { %775 = vmatpush.msrb.mxu1 %v683_v51 }
 0x13c   : > { %1068 = vmatmul.msk.f32.gmra.mxu0 %vm698_vm0, %v697_v6 }
 0x13d   : > { %776 = vmatpush.msrb.mxu1 %v681_v43 }
 0x13f   : > { %777 = vmatpush.msrb.mxu1 %v679_v36 }
 0x141   : > { %778 = vmatpush.msrb.mxu1 %v677_v30  ;;  %v846_v30 = vpop.permute.xlu2 %845 }
 0x143   : > { %779 = vmatpush.msrb.mxu1 %v1579_v22  ;;  %v836_v22 = vpop.permute.xlu0 %835 }
 0x144   : > { %1069 = vmatmul.msk.f32.vlgmr.msrb.gmra.mxu1 %vm698_vm0, %v690_v29 }
 0x14b   : > { %v851_v34 = vpop.permute.xlu0 %850 }
 0x14c   : > { %1070 = vmatmul.msk.f32.gmra.mxu1 %vm698_vm0, %v691_v35 }
 0x154   : > { %1071 = vmatmul.msk.f32.gmra.mxu1 %vm698_vm0, %v692_v41 }
 0x15c   : > { %1072 = vmatmul.msk.f32.gmra.mxu1 %vm698_vm0, %v693_v49 }
 0x164   : > { %1073 = vmatmul.msk.f32.gmra.mxu1 %vm698_vm0, %v694_v50 }
 0x16c   : > { %1074 = vmatmul.msk.f32.gmra.mxu1 %vm698_vm0, %v695_v56 }
 0x174   : > { %1075 = vmatmul.msk.f32.gmra.mxu1 %vm698_vm0, %v696_v5 }
 0x17c   : > { %1076 = vmatmul.msk.f32.gmra.mxu1 %vm698_vm0, %v697_v6 }
 0x181   : > { %v740_v7 = vpop.f32.mrf.mxu0 }
 0x182   : > { %v853_v8 = vmul.f32 %v816_v2, %v740_v7 }
 0x184   : > { %v875_v9 = vadd.f32 %v871_v61, %v853_v8 }
 0x186   : > { %891 = vst [vmem:[%s1622_s16] sm:$0xff] %v875_v9 }
 0x189   : > { %v743_v11 = vpop.f32.mrf.mxu0 }
 0x18a   : > { %v855_v12 = vmul.f32 %v821_v10, %v743_v11 }
 0x18c   : > { %v877_v13 = vadd.f32 %v871_v61, %v855_v12 }
 0x18e   : > { %893 = vst [vmem:[%s1622_s16 + $0x10] sm:$0xff] %v877_v13 }
 0x191   : > { %v746_v15 = vpop.f32.mrf.mxu0 }
 0x192   : > { %v857_v16 = vmul.f32 %v826_v14, %v746_v15 }
 0x194   : > { %v879_v17 = vadd.f32 %v871_v61, %v857_v16 }
 0x196   : > { %895 = vst [vmem:[%s1622_s16 + $0x20] sm:$0xff] %v879_v17 }
 0x199   : > { %v749_v19 = vpop.f32.mrf.mxu0 }
 0x19a   : > { %v859_v20 = vmul.f32 %v831_v18, %v749_v19 }
 0x19c   : > { %v881_v21 = vadd.f32 %v871_v61, %v859_v20 }
 0x19e   : > { %897 = vst [vmem:[%s1622_s16 + $0x30] sm:$0xff] %v881_v21 }
 0x1a1   : > { %v752_v23 = vpop.f32.mrf.mxu0 }
 0x1a2   : > { %v861_v24 = vmul.f32 %v836_v22, %v752_v23 }
 0x1a4   : > { %v883_v25 = vadd.f32 %v871_v61, %v861_v24 }
 0x1a6   : > { %899 = vst [vmem:[%s1622_s16 + $0x40] sm:$0xff] %v883_v25 }
 0x1a9   : > { %v755_v27 = vpop.f32.mrf.mxu0 }
 0x1aa   : > { %v863_v28 = vmul.f32 %v841_v26, %v755_v27 }
 0x1ac   : > { %v885_v29 = vadd.f32 %v871_v61, %v863_v28 }
 0x1ae   : > { %901 = vst [vmem:[%s1622_s16 + $0x50] sm:$0xff] %v885_v29 }
 0x1b1   : > { %v758_v31 = vpop.f32.mrf.mxu0 }
 0x1b2   : > { %v865_v32 = vmul.f32 %v846_v30, %v758_v31 }
 0x1b4   : > { %v887_v33 = vadd.f32 %v871_v61, %v865_v32 }
 0x1b6   : > { %903 = vst [vmem:[%s1622_s16 + $0x60] sm:$0xff] %v887_v33 }
 0x1b9   : > { %v761_v35 = vpop.f32.mrf.mxu0 }
 0x1ba   : > { %v867_v36 = vmul.f32 %v851_v34, %v761_v35 }
 0x1bc   : > { %v889_v37 = vadd.f32 %v871_v61, %v867_v36 }
 0x1be   : > { %905 = vst [vmem:[%s1622_s16 + $0x70] sm:$0xff] %v889_v37 }
 0x1c1   : > { %v781_v39 = vpop.f32.mrf.mxu1 }
 0x1c2   : > { %v854_v40 = vmul.f32 %v816_v2, %v781_v39 }
 0x1c4   : > { %v876_v41 = vadd.f32 %v872_v38, %v854_v40 }
 0x1c6   : > { %892 = vst [vmem:[%s1622_s16 + $0x8] sm:$0xff] %v876_v41 }
 0x1c9   : > { %v784_v43 = vpop.f32.mrf.mxu1 }
 0x1ca   : > { %v856_v44 = vmul.f32 %v821_v10, %v784_v43 }
 0x1cc   : > { %v878_v45 = vadd.f32 %v872_v38, %v856_v44 }
 0x1ce   : > { %894 = vst [vmem:[%s1622_s16 + $0x18] sm:$0xff] %v878_v45 }
 0x1d1   : > { %v787_v47 = vpop.f32.mrf.mxu1 }
 0x1d2   : > { %v858_v48 = vmul.f32 %v826_v14, %v787_v47 }
 0x1d4   : > { %v880_v49 = vadd.f32 %v872_v38, %v858_v48 }
 0x1d6   : > { %896 = vst [vmem:[%s1622_s16 + $0x28] sm:$0xff] %v880_v49 }
 0x1d9   : > { %v790_v51 = vpop.f32.mrf.mxu1 }
 0x1da   : > { %v860_v52 = vmul.f32 %v831_v18, %v790_v51 }
 0x1dc   : > { %v882_v53 = vadd.f32 %v872_v38, %v860_v52 }
 0x1de   : > { %898 = vst [vmem:[%s1622_s16 + $0x38] sm:$0xff] %v882_v53 }
 0x1e1   : > { %v793_v54 = vpop.f32.mrf.mxu1 }
 0x1e2   : > { %v862_v55 = vmul.f32 %v836_v22, %v793_v54 }
 0x1e4   : > { %v884_v50 = vadd.f32 %v872_v38, %v862_v55 }
 0x1e6   : > { %900 = vst [vmem:[%s1622_s16 + $0x48] sm:$0xff] %v884_v50 }
 0x1e9   : > { %v796_v57 = vpop.f32.mrf.mxu1 }
 0x1ea   : > { %v864_v58 = vmul.f32 %v841_v26, %v796_v57 }
 0x1ec   : > { %v886_v59 = vadd.f32 %v872_v38, %v864_v58 }
 0x1ee   : > { %902 = vst [vmem:[%s1622_s16 + $0x58] sm:$0xff] %v886_v59 }
 0x1f1   : > { %v799_v60 = vpop.f32.mrf.mxu1 }
 0x1f2   : > { %v866_v62 = vmul.f32 %v846_v30, %v799_v60 }
 0x1f4   : > { %v888_v56 = vadd.f32 %v872_v38, %v866_v62 }
 0x1f6   : > { %904 = vst [vmem:[%s1622_s16 + $0x68] sm:$0xff] %v888_v56 }
 0x1f9   : > { %v802_v63 = vpop.f32.mrf.mxu1 }
 0x1fa   : > { %v868_v0 = vmul.f32 %v851_v34, %v802_v63 }
 0x1fc   : > { %v890_v1 = vadd.f32 %v872_v38, %v868_v0 }
 0x1fe   : > { %906 = vst [vmem:[%s1622_s16 + $0x78] sm:$0xff] %v890_v1 }
 0x1ff   : > { %1273 = shalt.err (!%p1270_p12)
}
 0x200   : > { %s1324_s1 = smov 256   ;;  %s1325_s16 = smov 16  }
 0x201   : > { %1125 = dma.vmem_to_hbm [thread:$0]  (%p1433_p7), %s921_s11, 2048, %s923_s22, %s908_s14, %s1324_s1, %s1324_s1, %s1325_s16  }
 0x202 PF: > { %s937_s17 = sand.u32 1, %s1304_s24   ;;  %p1689_p13 = scmp.ge.s32.totalorder %s1316_s27, 2 }
 0x203   : > { %s938_s18 = scalar_lea.sflag [#allocation4], %s937_s17 }
 0x204   : > { %p1136_p0 = pnand %p1689_p13, %p1401_p6 }
 0x206   : > { %p1137_p3 = pneg %p1136_p0 }
 0x208   : > { %1299 = dma.done.wait (%p1137_p3), %s938_s18, 2048  }
 0x209   : > { %1301 = vsyncadd (%p1137_p3), %s938_s18, 4294965248  ;;  %p21_p5 = scmp.ge.s32.totalorder %s1419_s15, 4   ;;  %s1690_s24 = smov %s1308_s25 }
 0x20a   : > { %s1691_s25 = smov %s1312_s26  ;;  %s1692_s26 = smov %s1429_s20 }
 0x20b   : > { %s1693_s27 = smov %s1419_s15  ;;  %23 = sbr.rel (!%p21_p5) target bundleno = 8 (0x8), region = 107 }
 0x210   :  { %944 = vsyncpa [#allocation3], 1 }
 0x211   :  { %946 = vsyncpa [#allocation3 + $0x1], 1 }
 0x212   :  { %947 = vsyncpa [#allocation6], 1 }
 0x213   :  { %949 = vsyncpa [#allocation6 + $0x1], 1 }
 0x214   :  { %950 = vsyncpa [#allocation4], 1 }
 0x215   :  { %952 = vsyncpa [#allocation4 + $0x1], 1 }

</bundles_post_ra>
